<compile_context>
chip_gen: v7x
topology: tpu7x:2x2x1
jax: 0.10.0
libtpu: 0.0.40
codegen_flags: <defaults>
</compile_context>

<pallas_src>
import jax
import jax.numpy as jnp
from jax.experimental import pallas as pl
from jax.experimental.pallas import tpu as pltpu

# ---- small stand-in sizes (original: max_seq_len=256, hidden=768) ----------
B = 2               # batch
SEQ = 8             # stand-in for max_seq_len = 256
HIDDEN = 32         # stand-in for 768
VOCAB = 64
NUM_LABELS = 2
LOGITS_PAD = 128    # lane-dense output width; real logits live in [:, :NUM_LABELS]
OUT_B = 8           # sublane-padded batch rows in the output (full (8,128) vst)

R = 2 * B * SEQ     # total token rows across both siamese branches (branch-major)
POOL_ROWS = 2 * OUT_B  # pooled feature rows (branch0 padded batches, then branch1)


# -----------------------------------------------------------------------------
# Fused kernel: HBM row-gather + encoder stand-in + masked mean pool + head
# -----------------------------------------------------------------------------
def siamese_fused_kernel(ids_ref, pool_ref, emb_hbm_ref, w_enc_ref, b_enc_ref,
                         w_cls_ref, b_cls_ref, out_ref, x_gather, gather_sems):
    # ids_ref   : (R,)          int32  SMEM   token ids, branch-major row order
    # pool_ref  : (POOL_ROWS,R) bf16   VMEM   block-diag pooling matrix, mask folded in
    # emb_hbm   : (VOCAB, H)    f32    HBM    embedding table (gathered per row)
    # w_enc_ref : (H, H)        bf16   VMEM
    # b_enc_ref : (1, H)        f32    VMEM
    # w_cls_ref : (3H, 128)     bf16   VMEM   zero-padded past NUM_LABELS columns
    # b_cls_ref : (1, 128)      f32    VMEM
    # out_ref   : (OUT_B, 128)  f32    VMEM   lane/sublane-dense logits slab
    # x_gather  : (R, H)        f32    VMEM scratch (gathered embedding rows)
    # gather_sems: DMA sems, shape (R,)

    # ---- embedding row gather: HBM -> VMEM, one small DMA per token row --------
    @pl.loop(0, R)
    def _(i):
        pltpu.make_async_copy(
            emb_hbm_ref.at[pl.ds(ids_ref[i], 1), :],
            x_gather.at[pl.ds(i, 1), :],
            gather_sems.at[i],
        ).start()

    @pl.loop(0, R)
    def _(i):
        # wait is semaphore/size driven; src slice only needs matching shape
        pltpu.make_async_copy(
            emb_hbm_ref.at[pl.ds(0, 1), :],
            x_gather.at[pl.ds(i, 1), :],
            gather_sems.at[i],
        ).wait()

    x = x_gather[...].astype(jnp.bfloat16)                              # (R, H)

    # ---- encoder stand-in: one (R,H)@(H,H) MXU matmul; bias + tanh in f32 ------
    h = jnp.dot(x, w_enc_ref[...], preferred_element_type=jnp.float32)  # (R, H) f32
    h = jnp.tanh(h + b_enc_ref[...])                                    # f32 (v5e-safe)
    h_bf = h.astype(jnp.bfloat16)                                       # MXU boundary

    # ---- masked mean pool: precomputed block-diagonal bf16 matrix on the MXU ---
    pooled = jnp.dot(pool_ref[...], h_bf,
                     preferred_element_type=jnp.float32) * (1.0 / SEQ)  # (2*OUT_B, H)

    # ---- siamese head: single (OUT_B, 3H) @ (3H, 128) MXU matmul ---------------
    f0 = pooled[:OUT_B, :]
    f1 = pooled[OUT_B:, :]
    feats = jnp.concatenate([f0, f1, jnp.abs(f0 - f1)],
                            axis=1).astype(jnp.bfloat16)                # (OUT_B, 3H)
    logits = jnp.dot(feats, w_cls_ref[...],
                     preferred_element_type=jnp.float32) + b_cls_ref[...]
    out_ref[...] = logits                                               # full (8,128) vst


# -----------------------------------------------------------------------------
# Full SiameseModel forward (next_sentence_label=None branch -> returns logits)
# -----------------------------------------------------------------------------
def siamese_forward(params, b_input_ids, token_type_ids, attention_mask):
    del token_type_ids  # TODO(synk): wire token_type_ids into the real BERT encoder
    max_seq_len = SEQ

    def divide_into_two(t):
        return t[:, :max_seq_len], t[:, max_seq_len:]

    ids_0, ids_1 = divide_into_two(b_input_ids)
    am_0, am_1 = divide_into_two(attention_mask)

    # Stack the two siamese branches on the leading (row) axis: branch-major.
    ids_stacked = jnp.concatenate([ids_0, ids_1], axis=0)               # (2B, S)
    mask_stacked = jnp.concatenate([am_0, am_1], axis=0)                # (2B, S)
    ids_flat = jnp.clip(ids_stacked.reshape(R).astype(jnp.int32),
                        0, VOCAB - 1)                                   # bounds guard
    mask_flat = mask_stacked.reshape(R).astype(jnp.float32)             # (R,)

    # Block-diagonal pooling matrix with the mask folded in (0/1 values, bf16),
    # batch rows padded to OUT_B per branch so the kernel output is (8, 128).
    r_idx = jnp.arange(POOL_ROWS)
    c_idx = jnp.arange(R)
    branch = r_idx // OUT_B
    batch = r_idx % OUT_B
    row_start = branch * (B * SEQ) + batch * SEQ
    sel = ((c_idx[None, :] >= row_start[:, None])
           & (c_idx[None, :] < row_start[:, None] + SEQ)
           & (batch[:, None] < B))
    pool_w = jnp.where(sel, mask_flat[None, :], 0.0).astype(jnp.bfloat16)  # (2*OUT_B, R)

    vmem = pl.BlockSpec(memory_space=pltpu.MemorySpace.VMEM)
    smem = pl.BlockSpec(memory_space=pltpu.MemorySpace.SMEM)
    hbm = pl.BlockSpec(memory_space=pl.ANY)

    cost = pl.CostEstimate(
        flops=(2 * R * HIDDEN * HIDDEN                 # encoder matmul
               + 2 * POOL_ROWS * R * HIDDEN            # pooling matmul
               + 2 * OUT_B * 3 * HIDDEN * LOGITS_PAD), # head matmul
        transcendentals=R * HIDDEN,                    # tanh
        bytes_accessed=(R * 4 + POOL_ROWS * R * 2 + R * HIDDEN * 4
                        + HIDDEN * HIDDEN * 2 + HIDDEN * 4
                        + 3 * HIDDEN * LOGITS_PAD * 2 + LOGITS_PAD * 4
                        + OUT_B * LOGITS_PAD * 4),
    )

    logits_pad = pl.pallas_call(
        siamese_fused_kernel,
        out_shape=jax.ShapeDtypeStruct((OUT_B, LOGITS_PAD), jnp.float32),
        in_specs=[smem, vmem, hbm, vmem, vmem, vmem, vmem],
        out_specs=vmem,
        scratch_shapes=[pltpu.VMEM((R, HIDDEN), jnp.float32),
                        pltpu.SemaphoreType.DMA((R,))],
        cost_estimate=cost,
    )(ids_flat, pool_w, params["emb"], params["w_enc"], params["b_enc"],
      params["w_cls"], params["b_cls"])

    return logits_pad[:B, :NUM_LABELS]                                  # (B, 2)


# -----------------------------------------------------------------------------
# Pure-JAX reference mirroring the kernel's numerics (bf16 at MXU boundaries)
# -----------------------------------------------------------------------------
def siamese_reference(params, b_input_ids, token_type_ids, attention_mask):
    del token_type_ids

    def one_branch(ids, mask):
        x = params["emb"][ids].astype(jnp.bfloat16)                     # (B, S, H)
        h = jnp.einsum("bsh,hk->bsk", x, params["w_enc"],
                       preferred_element_type=jnp.float32)
        h = jnp.tanh(h + params["b_enc"][0])
        h = h.astype(jnp.bfloat16).astype(jnp.float32)
        h = h * mask[..., None].astype(jnp.float32)
        return h.mean(axis=1)                                           # torch.mean semantics

    f0 = one_branch(b_input_ids[:, :SEQ], attention_mask[:, :SEQ])
    f1 = one_branch(b_input_ids[:, SEQ:], attention_mask[:, SEQ:])
    feats = jnp.concatenate([f0, f1, jnp.abs(f0 - f1)], axis=1).astype(jnp.bfloat16)
    logits = jnp.dot(feats, params["w_cls"],
                     preferred_element_type=jnp.float32) + params["b_cls"]
    return logits[:, :NUM_LABELS]


def init_params(key):
    k1, k2, k3, k4, k5 = jax.random.split(key, 5)
    # classifier: nn.Linear(3*HIDDEN, NUM_LABELS), stored [3H, LOGITS_PAD] (lane-dense pad)
    w_cls = jnp.zeros((3 * HIDDEN, LOGITS_PAD), jnp.float32)
    w_cls = w_cls.at[:, :NUM_LABELS].set(
        jax.random.normal(k4, (3 * HIDDEN, NUM_LABELS), jnp.float32) * 0.2)
    b_cls = jnp.zeros((1, LOGITS_PAD), jnp.float32)
    b_cls = b_cls.at[:, :NUM_LABELS].set(
        jax.random.normal(k5, (1, NUM_LABELS), jnp.float32) * 0.1)
    return {
        # f32 HBM table, gathered row-by-row via DMA inside the kernel
        "emb":   jax.random.normal(k1, (VOCAB, HIDDEN), jnp.float32) * 0.5,
        "w_enc": (jax.random.normal(k2, (HIDDEN, HIDDEN), jnp.float32) * 0.2
                  ).astype(jnp.bfloat16),
        "b_enc": jax.random.normal(k3, (1, HIDDEN), jnp.float32) * 0.1,
        "w_cls": w_cls.astype(jnp.bfloat16),
        "b_cls": b_cls,
    }


if __name__ == "__main__":
    params = init_params(jax.random.PRNGKey(0))

    kid, _ = jax.random.split(jax.random.PRNGKey(0), 2)
    b_input_ids = jax.random.randint(kid, (B, 2 * SEQ), 0, VOCAB, dtype=jnp.int32)
    token_type_ids = jnp.zeros((B, 2 * SEQ), jnp.int32)
    attention_mask = jnp.ones((B, 2 * SEQ), jnp.int32)
    attention_mask = attention_mask.at[:, -3:].set(0)   # exercise the mask path

    logits = siamese_forward(params, b_input_ids, token_type_ids, attention_mask)
    logits = jax.block_until_ready(logits)
    ref = siamese_reference(params, b_input_ids, token_type_ids, attention_mask)

    assert logits.shape == (B, NUM_LABELS) and logits.dtype == jnp.float32
    assert jnp.allclose(logits, ref, atol=2e-3, rtol=2e-3), (logits, ref)
    print("KERNEL_OK")
</pallas_src>

<mosaic_0001>
module attributes {stable_mosaic.version = 11 : i64} {
  func.func @siamese_fused_kernel(%arg0: memref<32xi32, #tpu.memory_space<smem>>, %arg1: memref<16x32xbf16, #tpu.memory_space<vmem>>, %arg2: memref<64x32xf32, #tpu.memory_space<any>>, %arg3: memref<32x32xbf16, #tpu.memory_space<vmem>>, %arg4: memref<1x32xf32, #tpu.memory_space<vmem>>, %arg5: memref<96x128xbf16, #tpu.memory_space<vmem>>, %arg6: memref<1x128xf32, #tpu.memory_space<vmem>>, %arg7: memref<8x128xf32, #tpu.memory_space<vmem>>, %arg8: memref<32x32xf32, #tpu.memory_space<vmem>>, %arg9: memref<32x!tpu.dma_semaphore, #tpu.memory_space<semaphore_mem>>) attributes {dimension_semantics = [], scalar_prefetch = 0 : i64, scratch_operands = 2 : i64, tpu.core_type = #tpu.core_type<tc>} {
    %c0_i32 = arith.constant 0 : i32
    %c32_i32 = arith.constant 32 : i32
    %0 = arith.addi %c0_i32, %c32_i32 : i32
    %c1_i32 = arith.constant 1 : i32
    scf.for %arg10 = %c0_i32 to %0 step %c1_i32  : i32 {
      %c1_i32_21 = arith.constant 1 : i32
      %27 = arith.muli %arg10, %c1_i32_21 : i32
      %c0_i32_22 = arith.constant 0 : i32
      %28 = arith.addi %c0_i32_22, %27 : i32
      %29 = arith.index_cast %28 : i32 to index
      %30 = memref.load %arg0[%29] : memref<32xi32, #tpu.memory_space<smem>>
      %c0_i32_23 = arith.constant 0 : i32
      %31 = tpu.memref_slice %arg2[%30, %c0_i32_23] : memref<64x32xf32, #tpu.memory_space<any>> -> memref<1x32xf32, #tpu.memory_space<any>>
      %c0_i32_24 = arith.constant 0 : i32
      %32 = tpu.memref_slice %arg8[%28, %c0_i32_24] : memref<32x32xf32, #tpu.memory_space<vmem>> -> memref<1x32xf32, #tpu.memory_space<vmem>>
      %33 = tpu.memref_slice %arg9[%28] : memref<32x!tpu.dma_semaphore, #tpu.memory_space<semaphore_mem>> -> memref<1x!tpu.dma_semaphore, #tpu.memory_space<semaphore_mem>>
      %34 = tpu.memref_squeeze %33 : memref<1x!tpu.dma_semaphore, #tpu.memory_space<semaphore_mem>> -> memref<!tpu.dma_semaphore, #tpu.memory_space<semaphore_mem>>
      tpu.enqueue_dma source(%31 : memref<1x32xf32, #tpu.memory_space<any>>) target(%32 : memref<1x32xf32, #tpu.memory_space<vmem>>) target_semaphore(%34 : memref<!tpu.dma_semaphore, #tpu.memory_space<semaphore_mem>>)
    }
    %c32_i32_0 = arith.constant 32 : i32
    %c0_i32_1 = arith.constant 0 : i32
    %c32_i32_2 = arith.constant 32 : i32
    %1 = arith.addi %c0_i32_1, %c32_i32_2 : i32
    %c1_i32_3 = arith.constant 1 : i32
    scf.for %arg10 = %c0_i32_1 to %1 step %c1_i32_3  : i32 {
      %c1_i32_21 = arith.constant 1 : i32
      %27 = arith.muli %arg10, %c1_i32_21 : i32
      %c0_i32_22 = arith.constant 0 : i32
      %28 = arith.addi %c0_i32_22, %27 : i32
      %c0_i32_23 = arith.constant 0 : i32
      %c0_i32_24 = arith.constant 0 : i32
      %29 = tpu.memref_slice %arg2[%c0_i32_23, %c0_i32_24] : memref<64x32xf32, #tpu.memory_space<any>> -> memref<1x32xf32, #tpu.memory_space<any>>
      %c0_i32_25 = arith.constant 0 : i32
      %30 = tpu.memref_slice %arg8[%28, %c0_i32_25] : memref<32x32xf32, #tpu.memory_space<vmem>> -> memref<1x32xf32, #tpu.memory_space<vmem>>
      %31 = tpu.memref_slice %arg9[%28] : memref<32x!tpu.dma_semaphore, #tpu.memory_space<semaphore_mem>> -> memref<1x!tpu.dma_semaphore, #tpu.memory_space<semaphore_mem>>
      %32 = tpu.memref_squeeze %31 : memref<1x!tpu.dma_semaphore, #tpu.memory_space<semaphore_mem>> -> memref<!tpu.dma_semaphore, #tpu.memory_space<semaphore_mem>>
      tpu.wait_dma2 semaphore(%32 : memref<!tpu.dma_semaphore, #tpu.memory_space<semaphore_mem>>) src(%29 : memref<1x32xf32, #tpu.memory_space<any>>) dst(%30 : memref<1x32xf32, #tpu.memory_space<vmem>>)
    }
    %c32_i32_4 = arith.constant 32 : i32
    %c0 = arith.constant 0 : index
    %c0_5 = arith.constant 0 : index
    %2 = vector.load %arg8[%c0, %c0_5] : memref<32x32xf32, #tpu.memory_space<vmem>>, vector<32x32xf32>
    %3 = arith.truncf %2 : vector<32x32xf32> to vector<32x32xbf16>
    %c0_6 = arith.constant 0 : index
    %c0_7 = arith.constant 0 : index
    %4 = vector.load %arg3[%c0_6, %c0_7] : memref<32x32xbf16, #tpu.memory_space<vmem>>, vector<32x32xbf16>
    %cst = arith.constant dense<0.000000e+00> : vector<32x32xf32>
    %5 = tpu.matmul %3, %4, %cst {dimension_numbers = #tpu.dot_dimension_numbers<[1], [0], [0], [1], [0, 0, 1, 1], [], []>} : vector<32x32xbf16>, vector<32x32xbf16>, vector<32x32xf32> -> vector<32x32xf32>
    %c0_8 = arith.constant 0 : index
    %c0_9 = arith.constant 0 : index
    %6 = vector.load %arg4[%c0_8, %c0_9] : memref<1x32xf32, #tpu.memory_space<vmem>>, vector<1x32xf32>
    %7 = vector.broadcast %6 : vector<1x32xf32> to vector<32x32xf32>
    %8 = arith.addf %5, %7 : vector<32x32xf32>
    %9 = math.tanh %8 : vector<32x32xf32>
    %10 = arith.truncf %9 : vector<32x32xf32> to vector<32x32xbf16>
    %c0_10 = arith.constant 0 : index
    %c0_11 = arith.constant 0 : index
    %11 = vector.load %arg1[%c0_10, %c0_11] : memref<16x32xbf16, #tpu.memory_space<vmem>>, vector<16x32xbf16>
    %cst_12 = arith.constant dense<0.000000e+00> : vector<16x32xf32>
    %12 = tpu.matmul %11, %10, %cst_12 {dimension_numbers = #tpu.dot_dimension_numbers<[1], [0], [0], [1], [0, 0, 1, 1], [], []>} : vector<16x32xbf16>, vector<32x32xbf16>, vector<16x32xf32> -> vector<16x32xf32>
    %cst_13 = arith.constant 1.250000e-01 : f32
    %13 = vector.broadcast %cst_13 : f32 to vector<16x32xf32>
    %14 = arith.mulf %12, %13 : vector<16x32xf32>
    %15 = vector.extract_strided_slice %14 {offsets = [0, 0], sizes = [8, 32], strides = [1, 1]} : vector<16x32xf32> to vector<8x32xf32>
    %16 = vector.extract_strided_slice %14 {offsets = [8, 0], sizes = [8, 32], strides = [1, 1]} : vector<16x32xf32> to vector<8x32xf32>
    %17 = arith.subf %15, %16 : vector<8x32xf32>
    %18 = math.absf %17 : vector<8x32xf32>
    %19 = tpu.concatenate %15, %16, %18 in 1 : vector<8x32xf32>, vector<8x32xf32>, vector<8x32xf32> -> vector<8x96xf32>
    %20 = arith.truncf %19 : vector<8x96xf32> to vector<8x96xbf16>
    %c0_14 = arith.constant 0 : index
    %c0_15 = arith.constant 0 : index
    %21 = vector.load %arg5[%c0_14, %c0_15] : memref<96x128xbf16, #tpu.memory_space<vmem>>, vector<96x128xbf16>
    %cst_16 = arith.constant dense<0.000000e+00> : vector<8x128xf32>
    %22 = tpu.matmul %20, %21, %cst_16 {dimension_numbers = #tpu.dot_dimension_numbers<[1], [0], [0], [1], [0, 0, 1, 1], [], []>} : vector<8x96xbf16>, vector<96x128xbf16>, vector<8x128xf32> -> vector<8x128xf32>
    %c0_17 = arith.constant 0 : index
    %c0_18 = arith.constant 0 : index
    %23 = vector.load %arg6[%c0_17, %c0_18] : memref<1x128xf32, #tpu.memory_space<vmem>>, vector<1x128xf32>
    %24 = vector.broadcast %23 : vector<1x128xf32> to vector<8x128xf32>
    %25 = arith.addf %22, %24 : vector<8x128xf32>
    %c0_19 = arith.constant 0 : index
    %c0_20 = arith.constant 0 : index
    %26 = vector.load %arg7[%c0_19, %c0_20] : memref<8x128xf32, #tpu.memory_space<vmem>>, vector<8x128xf32>
    tpu.vector_store %arg7[%c0_19, %c0_20], %25 {strides = array<i32>} : memref<8x128xf32, #tpu.memory_space<vmem>>, vector<8x128xf32>,
    return
  }
}

</mosaic_0001>

<bundles_post_ra>
// kernel: tpu_custom_call.1
= control target key start
LH: loop header
LB: loop body
LE: loop exit
PB: predicated region body
PF: predicated region fallthrough
CT: control target
= control target key end

     0   :  { %12 = vsyncpa [#allocation6], 0  ;;  %s912_s0 = inlined_call_operand.vmem [shape: s32[32], index: 0, kind: input, shape index: {}]   ;;  %s913_s1 = inlined_call_operand.vmem [shape: bf16[16,32], index: 1, kind: input, shape index: {}]   ;;  %s914_s2 = inlined_call_operand.vmem [shape: f32[64,32], index: 2, kind: input, shape index: {}]   ;;  %s915_s3 = inlined_call_operand.vmem [shape: bf16[32,32], index: 3, kind: input, shape index: {}]   ;;  %s916_s4 = inlined_call_operand.vmem [shape: f32[1,32], index: 4, kind: input, shape index: {}]   ;;  %s917_s5 = inlined_call_operand.vmem [shape: bf16[96,128], index: 5, kind: input, shape index: {}]   ;;  %s918_s6 = inlined_call_operand.vmem [shape: f32[1,128], index: 6, kind: input, shape index: {}]   ;;  %s919_s7 = inlined_call_operand.hbm [shape: f32[8,128], index: 7, kind: output, shape index: {}]  }
   0x1   :  { %13 = vsyncpa [#allocation5], 0  ;;  %s20_s26 = sshll.u32 %s912_s0, 4  ;;  %s21_s26 = int_to_ptr.vmem [resolvable:$true] %s20_s26 }
   0x2   :  { %s755_s27 = scalar_lea.vmem %s21_s26, 16  ;;  %p760_p1 = scmp.lt.s32.totalorder %s21_s26, %s21_s26 }
   0x3   :  { %p756_p0 = scmp.ne.s32.totalorder %s21_s26, %s755_s27  ;;  %p761_p2 = scmp.lt.s32.totalorder %s755_s27, %s755_s27 }
   0x5   :  { %p762_p3 = por %p761_p2, %p760_p1 }
   0x7   :  { %p763_p4 = pnand %p762_p3, %p756_p0 }
   0x9   :  { %766 = shalt.err (!%p763_p4)
}
   0xa   :  { %s811_s28 = smov [#allocation4]  }
   0xb   :  { %23 = dma.vmem_to_smem %s21_s26, 16, %s811_s28, [#allocation6]  }
   0xc   :  { %797 = dma.done.wait [#allocation6], 16  }
   0xd   :  { %798 = vsyncadd [#allocation6], 4294967280 }
   0xe   :  { %37 = sfence }
   0xf   :  { %s803_s29 = smov 0  }
  0x10 LB: > { %s45_s30 = sld [smem:[#allocation4 + %s805_s29]]  ;;  %s47_s10 = scalar_lea.vmem [#allocation2], %s805_s29  ;;  %s805_s29 = sphi %s803_s29, %s44_s29  }
  0x11   : > { %s48_s11 = scalar_lea.sflag [#allocation3], %s805_s29 }
  0x16   : > { %s46_s9 = scalar_lea.vmem %s914_s2, %s45_s30 }
  0x17   : > { %v66_v0 = vld [vmem:[%s46_s9] sm:$0x1] }
  0x18   : > { %67 = vst [vmem:[%s47_s10] sm:$0x1] %v66_v0 }
  0x19   : > { %92 = vsyncadd %s48_s11, 16  ;;  %s44_s29 = sadd.s32 1, %s805_s29  }
  0x1a   : > { %p41_p5 = scmp.ge.s32.totalorder %s44_s29, 32  }
  0x1b   :  { %s807_s12 = smov (%p41_p5), 0  }
  0x1c   :  { %43 = sbr.rel (!%p41_p5) target bundleno = 16 (0x10), region = 137 }
  0x23 LB: > { %s99_s13 = scalar_lea.sflag [#allocation3], %s809_s12  ;;  %s809_s12 = sphi %s807_s12, %s98_s12  }
  0x24   : > { %799 = dma.done.wait %s99_s13, 16 }
  0x25   : > { %800 = vsyncadd %s99_s13, 4294967280  ;;  %s98_s12 = sadd.s32 1, %s809_s12  }
  0x26   : > { %p95_p6 = scmp.ge.s32.totalorder %s98_s12, 32  }
  0x27   :  { %v738_v1 = vld [vmem:[%s915_s3] sm:$0xff] (%p95_p6)   ;;  %v739_v2 = vld [vmem:[%s915_s3 + $0x8] sm:$0xff] (%p95_p6)   ;;  %vm132_vm0 = vcmask (%p95_p6), 261120   ;;  %v105_v5 = vld [vmem:[#allocation2 + $0x10] sm:$0xff] (%p95_p6)  ;;  %v812_v9 = vmov (%p95_p6), 0.0   ;;  %vm813_vm1 = vmmov (%p95_p6), 0  }
  0x28   :  { %97 = sbr.rel (!%p95_p6) target bundleno = 35 (0x23), region = 148  ;;  %684 = vmatprep.subr.bf16.mxu1 (%p95_p6), %v738_v1  ;;  %v103_v3 = vld [vmem:[#allocation2] sm:$0xff] (%p95_p6)  ;;  %v104_v4 = vld [vmem:[#allocation2 + $0x8] sm:$0xff] (%p95_p6)  ;;  %v106_v7 = vld [vmem:[#allocation2 + $0x18] sm:$0xff] (%p95_p6)  ;;  %700 = vmatprep.subr.bf16.mxu0 (%p95_p6), %v812_v9  ;;  %s814_s30 = smov (%p95_p6), 32   ;;  %vm258_vm2 = vcmask (%p95_p6), 523264  }
  0x29   :  { %685 = vmatpush3.bf16.msra.mxu1 (%p95_p6), %v738_v1  ;;  %v107_v6 = vpack.c.bf16 (%p95_p6), %v104_v4, %v103_v3  ;;  %v108_v8 = vpack.c.bf16 (%p95_p6), %v106_v7, %v105_v5  ;;  %712 = vmatprep.mubr.msk.bf16.mxu0 (%p95_p6), %vm813_vm1, %v812_v9  ;;  %v623_v10 = vld [vmem:[%s916_s4] ss:$0 sm:$0xff] (%p95_p6)  ;;  %v742_v27 = vld [vmem:[%s917_s5 + $0x8] sm:$0xff] (%p95_p6)   ;;  %v743_v28 = vld [vmem:[%s917_s5 + $0x10] sm:$0xff] (%p95_p6)   ;;  %s815_s8 = smov (%p95_p6), 64   ;;  %vm316_vm3 = vcmask (%p95_p6), 785408  }
  0x2a   :  { %686 = vmatprep.subr.bf16.mxu1 (%p95_p6), %v739_v2  ;;  %v740_v25 = vld [vmem:[%s913_s1] sm:$0xff] (%p95_p6)   ;;  %v744_v29 = vld [vmem:[%s917_s5 + $0x18] sm:$0xff] (%p95_p6)   ;;  %v746_v31 = vld [vmem:[%s917_s5 + $0x28] sm:$0xff] (%p95_p6)   ;;  %s816_s9 = smov (%p95_p6), [#allocation7]  }
  0x2b   :  { %688 = vmatprep.mubr.msk.bf16.mxu1 (%p95_p6), %vm132_vm0, %v107_v6  ;;  %v741_v26 = vld [vmem:[%s917_s5] sm:$0xff] (%p95_p6)   ;;  %s367_s10 = sshll.u32 (%p95_p6), %s816_s9, 4  ;;  %s368_s10 = int_to_ptr.vmem [resolvable:$true] %s367_s10 }
  0x2c   :  { %701 = vmatpush3.bf16.msra.mxu0 (%p95_p6), %v741_v26  ;;  %v745_v30 = vld [vmem:[%s917_s5 + $0x20] sm:$0xff] (%p95_p6)   ;;  %s767_s11 = scalar_lea.vmem (%p95_p6), %s368_s10, 128  ;;  %p772_p8 = scmp.lt.s32.totalorder (%p95_p6), %s368_s10, %s368_s10 }
  0x2d   :  { %687 = vmatpush3.bf16.msra.mxu1 (%p95_p6), %v739_v2  ;;  %702 = vmatprep.subr.bf16.mxu0 (%p95_p6), %v812_v9  ;;  %v630_v45 = vld [vmem:[%s918_s6] ss:$0 sm:$0xff] (%p95_p6)  ;;  %p768_p7 = scmp.ne.s32.totalorder (%p95_p6), %s368_s10, %s767_s11  ;;  %p773_p9 = scmp.lt.s32.totalorder (%p95_p6), %s767_s11, %s767_s11 }
  0x2e   :  { %692 = vmatprep.subr.bf16.mxu1 (%p95_p6), %v812_v9 }
  0x2f   :  { %p774_p10 = por %p773_p9, %p772_p8 }
  0x30   :  { %689 = vmatmul.mubr.msk.bf16.vlgmr.msra.gmra.mrb[0].mxu1 %vm132_vm0, %v108_v8  ;;  %703 = vmatpush3.bf16.msra.mxu0 %v742_v27 }
  0x31   :  { %696 = vmatprep.mubr.msk.bf16.mxu1 %vm813_vm1, %v812_v9  ;;  %704 = vmatprep.subr.bf16.mxu0 %v812_v9  ;;  %p775_p11 = pnand %p774_p10, %p768_p7 }
  0x34   :  { %705 = vmatpush3.bf16.msra.mxu0 %v743_v28 }
  0x35   :  { %706 = vmatprep.subr.bf16.mxu0 %v812_v9 }
  0x38   :  { %707 = vmatpush3.bf16.msra.mxu0 %v744_v29 }
  0x39   :  { %708 = vmatprep.subr.bf16.mxu0 %v812_v9 }
  0x3c   :  { %709 = vmatpush3.bf16.msra.mxu0 %v745_v30 }
  0x3d   :  { %710 = vmatprep.subr.bf16.mxu0 %v812_v9 }
  0x40   :  { %711 = vmatpush3.bf16.msra.mxu0 %v746_v31 }
 0x103   :  { %v690_v11 = vpop.f32.mrb[0].mxu1 }
 0x104   :  { %v182_v12 = vadd.f32 %v690_v11, %v623_v10  ;;  %v173_v13 = vpop.f32.mrb[1].mxu1 }
 0x105   :  { %v174_v14 = vadd.f32 %v623_v10, %v173_v13  ;;  %v691_v15 = vpop.f32.mrb[2].mxu1 }
 0x106   :  { %747 = vtanh.f32 %v182_v12  ;;  %v185_v16 = vadd.f32 %v691_v15, %v623_v10  ;;  %v176_v17 = vpop.f32.mrb[3].mxu1 }
 0x107   :  { %749 = vtanh.f32 %v174_v14  ;;  %v177_v18 = vadd.f32 %v623_v10, %v176_v17 }
 0x108   :  { %751 = vtanh.f32 %v185_v16 }
 0x109   :  { %753 = vtanh.f32 %v177_v18 }
 0x110   :  { %v748_v19 = vpop.eup %747 }
 0x111   :  { %v750_v20 = vpop.eup %749 }
 0x112   :  { %v752_v21 = vpop.eup %751 }
 0x113   :  { %v754_v22 = vpop.eup %753  ;;  %v193_v23 = vpack.c.bf16 %v752_v21, %v748_v19 }
 0x114   :  { %v192_v24 = vpack.c.bf16 %v754_v22, %v750_v20 }
 0x116   :  { %693 = vmatpush3.bf16.msra.mxu1 %v192_v24 }
 0x117   :  { %694 = vmatprep.subr.bf16.mxu1 %v812_v9 }
 0x11a   :  { %695 = vmatpush3.bf16.msra.mxu1 %v193_v23 }
 0x11d   :  { %697 = vmatmul.mubr.msk.bf16.vlgmr.msra.gmra.mrb[4].mxu1 %vm132_vm0, %v740_v25 }
 0x1f0   :  { %v238_v32 = vpop.f32.mrb[4].mxu1 }
 0x1f1   :  { %v698_v33 = vpop.f32.mrb[5].mxu1  ;;  %v245_v35 = vmul.f32 0.125, %v238_v32 }
 0x1f2   :  { %v241_v34 = vpop.f32.mrb[6].mxu1 }
 0x1f3   :  { %v246_v36 = vmul.f32 0.125, %v241_v34  ;;  %v699_v37 = vpop.f32.mrb[7].mxu1 }
 0x1f5   :  { %v247_v38 = vsub.f32 %v245_v35, %v246_v36  ;;  %250 = vrot.lane.b32.xlu0 %v246_v36, %s814_s30 }
 0x1f7   :  { %v248_v39 = vand.u32 2147483647, %v247_v38 }
 0x1f9   :  { %254 = vrot.lane.b32.xlu0 %v248_v39, %s815_s8 }
 0x267   :  { %v251_v40 = vpop.permute.xlu0 %250 }
 0x268   :  { %v257_v41 = vsel %vm132_vm0, %v245_v35, %v251_v40 }
 0x26b   :  { %v255_v42 = vpop.permute.xlu0 %254 }
 0x26c   :  { %v259_v43 = vsel %vm258_vm2, %v257_v41, %v255_v42 }
 0x26d   :  { %v260_v44 = vpack.c.bf16 %v259_v43, %v259_v43 }
 0x26f   :  { %713 = vmatmul.mubr.msk.bf16.vlgmr.msra.gmra.mrb[0].mxu0 %vm316_vm3, %v260_v44 }
 0x342   :  { %v354_v46 = vpop.f32.mrb[0].mxu0 }
 0x343   :  { %v355_v47 = vadd.f32 %v630_v45, %v354_v46  ;;  %v714_v48 = vpop.f32.mrb[1].mxu0 }
 0x344   :  { %v357_v49 = vpop.f32.mrb[2].mxu0 }
 0x345   :  { %360 = vst [vmem:[#allocation7] sm:$0xff] %v355_v47  ;;  %v715_v50 = vpop.f32.mrb[3].mxu0 }
 0x346   :  { %778 = shalt.err (!%p775_p11)
}
 0x347   :  { %s779_s6 = scalar_lea.hbm %s919_s7, 128 }
 0x348   :  { %p780_p12 = scmp.ne.s32.totalorder %s919_s7, %s779_s6  ;;  %p783_p13 = scmp.lt.u32.totalorder %s779_s6, %s919_s7 }
 0x34a   :  { %p785_p0 = pnand %p783_p13, %p780_p12 }
 0x34c   :  { %788 = shalt.err (!%p785_p0)
}
 0x34d   :  { %370 = dma.vmem_to_hbm [thread:$0]  %s368_s10, 128, %s919_s7, [#allocation5]  }
 0x34e   :  { %801 = dma.done.wait [#allocation5], 128  }
 0x34f   :  { %802 = vsyncadd [#allocation5], 4294967168 }
 0x350   :  { %374 = vsyncpa [#allocation5], 1 }
 0x351   :  { %375 = vsyncpa [#allocation6], 1 }
 0x352   :  { %376 = vsyncmov [#allocation3] }
 0x355   :  { %s377_s4 = vpop.sfrf %376 }
 0x356   :  { %p638_p1 = scmp.ne.s32.totalorder %s377_s4, 0 }
 0x358   :  { %381 = shalt.err (%p638_p1)  }
 0x359   :  { %383 = vsyncmov [#allocation3 + $0x1] }
 0x35c   :  { %s384_s18 = vpop.sfrf %383 }
 0x35d   :  { %p639_p2 = scmp.ne.s32.totalorder %s384_s18, 0 }
 0x35f   :  { %388 = shalt.err (%p639_p2)  }
 0x360   :  { %390 = vsyncmov [#allocation3 + $0x2] }
 0x363   :  { %s391_s19 = vpop.sfrf %390 }
 0x364   :  { %p640_p3 = scmp.ne.s32.totalorder %s391_s19, 0 }
 0x366   :  { %395 = shalt.err (%p640_p3)  }
 0x367   :  { %397 = vsyncmov [#allocation3 + $0x3] }
 0x36a   :  { %s398_s20 = vpop.sfrf %397 }
 0x36b   :  { %p641_p4 = scmp.ne.s32.totalorder %s398_s20, 0 }
 0x36d   :  { %402 = shalt.err (%p641_p4)  }
 0x36e   :  { %404 = vsyncmov [#allocation3 + $0x4] }
 0x371   :  { %s405_s7 = vpop.sfrf %404 }
 0x372   :  { %p642_p5 = scmp.ne.s32.totalorder %s405_s7, 0 }
 0x374   :  { %409 = shalt.err (%p642_p5)  }
 0x375   :  { %411 = vsyncmov [#allocation3 + $0x5] }
 0x378   :  { %s412_s21 = vpop.sfrf %411 }
 0x379   :  { %p643_p6 = scmp.ne.s32.totalorder %s412_s21, 0 }
 0x37b   :  { %416 = shalt.err (%p643_p6)  }
 0x37c   :  { %418 = vsyncmov [#allocation3 + $0x6] }
 0x37f   :  { %s419_s22 = vpop.sfrf %418 }
 0x380   :  { %p644_p7 = scmp.ne.s32.totalorder %s419_s22, 0 }
 0x382   :  { %423 = shalt.err (%p644_p7)  }
 0x383   :  { %425 = vsyncmov [#allocation3 + $0x7] }
 0x386   :  { %s426_s23 = vpop.sfrf %425 }
 0x387   :  { %p645_p8 = scmp.ne.s32.totalorder %s426_s23, 0 }
 0x389   :  { %430 = shalt.err (%p645_p8)  }
 0x38a   :  { %432 = vsyncmov [#allocation3 + $0x8] }
 0x38d   :  { %s433_s24 = vpop.sfrf %432 }
 0x38e   :  { %p646_p9 = scmp.ne.s32.totalorder %s433_s24, 0 }
 0x390   :  { %437 = shalt.err (%p646_p9)  }
 0x391   :  { %439 = vsyncmov [#allocation3 + $0x9] }
 0x394   :  { %s440_s1 = vpop.sfrf %439 }
 0x395   :  { %p647_p10 = scmp.ne.s32.totalorder %s440_s1, 0 }
 0x397   :  { %444 = shalt.err (%p647_p10)  }
 0x398   :  { %446 = vsyncmov [#allocation3 + $0xa] }
 0x39b   :  { %s447_s25 = vpop.sfrf %446 }
 0x39c   :  { %p648_p11 = scmp.ne.s32.totalorder %s447_s25, 0 }
 0x39e   :  { %451 = shalt.err (%p648_p11)  }
 0x39f   :  { %453 = vsyncmov [#allocation3 + $0xb] }
 0x3a2   :  { %s454_s26 = vpop.sfrf %453 }
 0x3a3   :  { %p649_p12 = scmp.ne.s32.totalorder %s454_s26, 0 }
 0x3a5   :  { %458 = shalt.err (%p649_p12)  }
 0x3a6   :  { %460 = vsyncmov [#allocation3 + $0xc] }
 0x3a9   :  { %s461_s27 = vpop.sfrf %460 }
 0x3aa   :  { %p650_p13 = scmp.ne.s32.totalorder %s461_s27, 0 }
 0x3ac   :  { %465 = shalt.err (%p650_p13)  }
 0x3ad   :  { %467 = vsyncmov [#allocation3 + $0xd] }
 0x3b0   :  { %s468_s28 = vpop.sfrf %467 }
 0x3b1   :  { %p651_p0 = scmp.ne.s32.totalorder %s468_s28, 0 }
 0x3b3   :  { %472 = shalt.err (%p651_p0)  }
 0x3b4   :  { %474 = vsyncmov [#allocation3 + $0xe] }
 0x3b7   :  { %s475_s29 = vpop.sfrf %474 }
 0x3b8   :  { %p652_p1 = scmp.ne.s32.totalorder %s475_s29, 0 }
 0x3ba   :  { %479 = shalt.err (%p652_p1)  }
 0x3bb   :  { %481 = vsyncmov [#allocation3 + $0xf] }
 0x3be   :  { %s482_s30 = vpop.sfrf %481 }
 0x3bf   :  { %p653_p2 = scmp.ne.s32.totalorder %s482_s30, 0 }
 0x3c1   :  { %486 = shalt.err (%p653_p2)  }
 0x3c2   :  { %488 = vsyncmov [#allocation3 + $0x10] }
 0x3c5   :  { %s489_s8 = vpop.sfrf %488 }
 0x3c6   :  { %p654_p3 = scmp.ne.s32.totalorder %s489_s8, 0 }
 0x3c8   :  { %493 = shalt.err (%p654_p3)  }
 0x3c9   :  { %495 = vsyncmov [#allocation3 + $0x11] }
 0x3cc   :  { %s496_s5 = vpop.sfrf %495 }
 0x3cd   :  { %p655_p4 = scmp.ne.s32.totalorder %s496_s5, 0 }
 0x3cf   :  { %500 = shalt.err (%p655_p4)  }
 0x3d0   :  { %502 = vsyncmov [#allocation3 + $0x12] }
 0x3d3   :  { %s503_s0 = vpop.sfrf %502 }
 0x3d4   :  { %p656_p5 = scmp.ne.s32.totalorder %s503_s0, 0 }
 0x3d6   :  { %507 = shalt.err (%p656_p5)  }
 0x3d7   :  { %509 = vsyncmov [#allocation3 + $0x13] }
 0x3da   :  { %s510_s9 = vpop.sfrf %509 }
 0x3db   :  { %p657_p6 = scmp.ne.s32.totalorder %s510_s9, 0 }
 0x3dd   :  { %514 = shalt.err (%p657_p6)  }
 0x3de   :  { %516 = vsyncmov [#allocation3 + $0x14] }
 0x3e1   :  { %s517_s10 = vpop.sfrf %516 }
 0x3e2   :  { %p658_p7 = scmp.ne.s32.totalorder %s517_s10, 0 }
 0x3e4   :  { %521 = shalt.err (%p658_p7)  }
 0x3e5   :  { %523 = vsyncmov [#allocation3 + $0x15] }
 0x3e8   :  { %s524_s11 = vpop.sfrf %523 }
 0x3e9   :  { %p659_p8 = scmp.ne.s32.totalorder %s524_s11, 0 }
 0x3eb   :  { %528 = shalt.err (%p659_p8)  }
 0x3ec   :  { %530 = vsyncmov [#allocation3 + $0x16] }
 0x3ef   :  { %s531_s12 = vpop.sfrf %530 }
 0x3f0   :  { %p660_p9 = scmp.ne.s32.totalorder %s531_s12, 0 }
 0x3f2   :  { %535 = shalt.err (%p660_p9)  }
 0x3f3   :  { %537 = vsyncmov [#allocation3 + $0x17] }
 0x3f6   :  { %s538_s13 = vpop.sfrf %537 }
 0x3f7   :  { %p661_p10 = scmp.ne.s32.totalorder %s538_s13, 0 }
 0x3f9   :  { %542 = shalt.err (%p661_p10)  }
 0x3fa   :  { %544 = vsyncmov [#allocation3 + $0x18] }
 0x3fd   :  { %s545_s6 = vpop.sfrf %544 }
 0x3fe   :  { %p662_p11 = scmp.ne.s32.totalorder %s545_s6, 0 }
 0x400   :  { %549 = shalt.err (%p662_p11)  }
 0x401   :  { %551 = vsyncmov [#allocation3 + $0x19] }
 0x404   :  { %s552_s14 = vpop.sfrf %551 }
 0x405   :  { %p663_p12 = scmp.ne.s32.totalorder %s552_s14, 0 }
 0x407   :  { %556 = shalt.err (%p663_p12)  }
 0x408   :  { %558 = vsyncmov [#allocation3 + $0x1a] }
 0x40b   :  { %s559_s15 = vpop.sfrf %558 }
 0x40c   :  { %p664_p13 = scmp.ne.s32.totalorder %s559_s15, 0 }
 0x40e   :  { %563 = shalt.err (%p664_p13)  }
 0x40f   :  { %565 = vsyncmov [#allocation3 + $0x1b] }
 0x412   :  { %s566_s16 = vpop.sfrf %565 }
 0x413   :  { %p665_p0 = scmp.ne.s32.totalorder %s566_s16, 0 }
 0x415   :  { %570 = shalt.err (%p665_p0)  }
 0x416   :  { %572 = vsyncmov [#allocation3 + $0x1c] }
 0x419   :  { %s573_s17 = vpop.sfrf %572 }
 0x41a   :  { %p666_p1 = scmp.ne.s32.totalorder %s573_s17, 0 }
 0x41c   :  { %577 = shalt.err (%p666_p1)  }
 0x41d   :  { %579 = vsyncmov [#allocation3 + $0x1d] }
 0x420   :  { %s580_s2 = vpop.sfrf %579 }
 0x421   :  { %p667_p2 = scmp.ne.s32.totalorder %s580_s2, 0 }
 0x423   :  { %584 = shalt.err (%p667_p2)  }
 0x424   :  { %586 = vsyncmov [#allocation3 + $0x1e] }
 0x427   :  { %s587_s3 = vpop.sfrf %586 }
 0x428   :  { %p668_p3 = scmp.ne.s32.totalorder %s587_s3, 0 }
 0x42a   :  { %591 = shalt.err (%p668_p3)  }
 0x42b   :  { %593 = vsyncmov [#allocation3 + $0x1f] }
 0x42e   :  { %s594_s4 = vpop.sfrf %593 }
 0x42f   :  { %p669_p4 = scmp.ne.s32.totalorder %s594_s4, 0 }
 0x431   :  { %598 = shalt.err (%p669_p4)  }

</bundles_post_ra>
